<compile_context>
chip_gen: v6e
topology: v6e:2x2x1
jax: 0.10.0
libtpu: 0.0.40
codegen_flags: <defaults>
</compile_context>

<pallas_src>
import functools

import jax
import jax.numpy as jnp
from jax.experimental import pallas as pl
from jax.experimental.pallas import tpu as pltpu

_HALF_LOG_2PI = 0.9189385332046727  # 0.5 * log(2*pi)
_LANE = 128


def _round_up(x, m):
    return ((x + m - 1) // m) * m


def _has_bf16_vpu():
    """bf16 VALU exists on v6e/v7x; v5e (and older) must stay f32 elementwise."""
    try:
        kind = jax.devices()[0].device_kind.lower()
    except Exception:
        return False
    return any(t in kind for t in ("v6", "v7"))


# ----------------------------------------------------------------------------
# Pallas kernel: full forward pass of ActorCriticModel for one batch tile
# ----------------------------------------------------------------------------
def _actor_critic_kernel(sample, bf16_ew,
                         state_ref, eps_ref,
                         w1_ref, b1_ref, w2_ref, b2_ref, wh_ref, bh_ref,
                         out_ref):
    f32 = jnp.float32

    def bias_relu(acc, b_ref):
        if bf16_ew:
            # v6e/v7x: cast the f32 accumulator once, then add/max in bf16.
            h = acc.astype(jnp.bfloat16) + b_ref[...].astype(jnp.bfloat16)
            return jnp.maximum(h, 0.0)
        # v5e: f32 elementwise chain, single cast to bf16 for the next matmul.
        return jnp.maximum(acc + b_ref[...], 0.0).astype(jnp.bfloat16)

    # fc1 -> relu   (bf16 MXU inputs, f32 accumulate)
    h1 = bias_relu(
        jnp.dot(state_ref[...], w1_ref[...], preferred_element_type=f32), b1_ref)

    # fc2 -> relu
    h2 = bias_relu(
        jnp.dot(h1, w2_ref[...], preferred_element_type=f32), b2_ref)

    # Fused heads in ONE lane-dense matmul. Column layout of wh/bh:
    #   [0:128)   actor-mean  (cols [0:A) real, rest zero-padded)
    #   [128:256) actor-std
    #   [256:384) critic value (col 256 real)
    heads = jnp.dot(h2, wh_ref[...], preferred_element_type=f32) + bh_ref[...]

    mean = jnp.tanh(heads[:, 0:128])

    # Numerically stable softplus (matches torch F.softplus within f32):
    #   softplus(z) = max(z, 0) + log1p(exp(-|z|)),  with the far-negative tail
    #   taken as exp(z) so std never collapses to 0 / log(std) to -inf.
    z = heads[:, 128:256]
    u = jnp.exp(-jnp.abs(z))                      # = exp(z) for z <= 0
    sp = jnp.maximum(z, 0.0) + jnp.log(1.0 + u)
    std = jnp.where(z < -8.0, u, sp)

    value = heads[:, 256:384]

    if sample:
        # Reparameterized sample: action = mean + std * eps (eps passed in).
        action = mean + std * eps_ref[...]
    else:
        action = eps_ref[...]

    log_std = jnp.log(std)
    diff = (action - mean) / std                  # exact divide: feeds PPO ratio
    logp = -0.5 * diff * diff - log_std - _HALF_LOG_2PI
    ent = 0.5 + _HALF_LOG_2PI + log_std

    # One lane-dense (TB, 512) slab; all stores 128-aligned and unmasked.
    out_ref[:, 0:128] = action
    out_ref[:, 128:256] = logp
    out_ref[:, 256:384] = ent
    out_ref[:, 384:512] = value


# ----------------------------------------------------------------------------
# Parameter packing: fuse head weights into 128-lane blocks, cast to bf16
# ----------------------------------------------------------------------------
def pack_params(params):
    A = params["wm"].shape[1]
    assert A <= _LANE, "action_size > 128 needs a wider head layout"
    F2 = params["wm"].shape[0]
    hpad = 3 * _LANE

    wh = jnp.zeros((F2, hpad), jnp.float32)
    wh = wh.at[:, 0:A].set(params["wm"])
    wh = wh.at[:, _LANE:_LANE + A].set(params["ws"])
    wh = wh.at[:, 2 * _LANE:2 * _LANE + 1].set(params["wc"])

    bh = jnp.zeros((1, hpad), jnp.float32)
    bh = bh.at[:, 0:A].set(params["bm"])
    bh = bh.at[:, _LANE:_LANE + A].set(params["bs"])
    bh = bh.at[:, 2 * _LANE:2 * _LANE + 1].set(params["bc"])

    # TODO(synk): on v7x, w2/wh could be stored fp8 (e4m3, per-column scales)
    # to halve the dominant weight DMA; kept bf16 pending PPO-ratio validation.
    return {
        "A": int(A),
        "w1": params["w1"].astype(jnp.bfloat16),
        "b1": params["b1"].astype(jnp.float32),
        "w2": params["w2"].astype(jnp.bfloat16),
        "b2": params["b2"].astype(jnp.float32),
        "wh": wh.astype(jnp.bfloat16),
        "bh": bh.astype(jnp.float32),
    }


# ----------------------------------------------------------------------------
# Batch tiling: big tiles amortize the ~0.35us/step pipeline overhead; when the
# batch is large enough, guarantee >= 2 evenly sized steps so the "parallel"
# axis shards across both TensorCores on v7x (tiles capped at 1024 rows).
# ----------------------------------------------------------------------------
def _choose_batch_tile(B):
    b16 = _round_up(max(B, 1), 16)          # 16: bf16 sublane packing of state
    if b16 <= 256:
        return b16, b16                     # single step for small batches
    steps = max(2, -(-b16 // 1024))
    tb = _round_up(-(-b16 // steps), 16)
    return tb, tb * steps


# ----------------------------------------------------------------------------
# Wrapper
# ----------------------------------------------------------------------------
def actor_critic_forward(packed, state, action=None, *, sample_key=None):
    """ActorCriticModel forward via one Pallas TPU kernel.

    packed: dict from pack_params().
    state:  (B, state_size) float32
    action: optional (B, action_size). If None, a Normal sample is drawn using
            sample_key (reparameterization: mean + std * eps).
    Returns (action, log_prob, entropy, value).
    """
    A = packed["A"]
    B, S = state.shape
    F1 = packed["w1"].shape[1]
    F2 = packed["w2"].shape[1]
    HPAD = packed["wh"].shape[1]
    OUT_PAD = 4 * _LANE                      # [action | logp | ent | value]

    sample = action is None
    if sample:
        assert sample_key is not None
        # TODO(synk): eps could be drawn in-kernel via pltpu.prng_seed /
        # prng_random_bits (+ Box-Muller) to drop this HBM input; kept external
        # for jax.random reproducibility.
        act_in = jax.random.normal(sample_key, (B, A), dtype=jnp.float32)
    else:
        act_in = action.astype(jnp.float32)

    TB, B_pad = _choose_batch_tile(B)
    grid = (B_pad // TB,)

    # state streamed as bf16 (half the DMA); eps padded lane-dense to 128.
    state = state.astype(jnp.bfloat16)
    state = jnp.pad(state, ((0, B_pad - B), (0, 0)))
    act_in = jnp.pad(act_in, ((0, B_pad - B), (0, _LANE - A)))

    def batch_spec(feat):
        return pl.BlockSpec((TB, feat), lambda i: (i, 0))

    def resident(shape):
        # Weights/biases stay VMEM-resident across grid steps (constant block).
        # NOTE: default double-buffering costs ~1.5 MiB extra for these small
        # weights; single-buffering (pl.Buffered(1)) is only worth wiring up if
        # fc1/fc2 grow enough to pressure v7x's 64 MiB VMEM.
        return pl.BlockSpec(shape, lambda i: (0, 0))

    bf16_ew = _has_bf16_vpu()
    kernel = functools.partial(_actor_critic_kernel, sample, bf16_ew)

    flops = 2 * B_pad * (S * F1 + F1 * F2 + F2 * HPAD)
    transcendentals = B_pad * _LANE * 4      # tanh, exp, log(softplus), log(std)
    bytes_accessed = (
        2 * (packed["w1"].size + packed["w2"].size + packed["wh"].size)   # bf16 w
        + 4 * (packed["b1"].size + packed["b2"].size + packed["bh"].size)
        + 2 * state.size + 4 * act_in.size + 4 * B_pad * OUT_PAD)

    out = pl.pallas_call(
        kernel,
        out_shape=jax.ShapeDtypeStruct((B_pad, OUT_PAD), jnp.float32),
        grid=grid,
        in_specs=[
            batch_spec(S),          # state tile (bf16)
            batch_spec(_LANE),      # eps / fixed action tile (lane-dense)
            resident((S, F1)),      # w1 (bf16)
            resident((1, F1)),      # b1
            resident((F1, F2)),     # w2 (bf16)
            resident((1, F2)),      # b2
            resident((F2, HPAD)),   # fused head weights (bf16)
            resident((1, HPAD)),    # fused head bias
        ],
        out_specs=batch_spec(OUT_PAD),
        compiler_params=pltpu.CompilerParams(
            dimension_semantics=("parallel",),
            # Fits TB=1024 comfortably; also within v7x's smaller 64 MiB VMEM.
            # (v5e/v6e have 128 MiB physical; raise only if the model grows.)
            vmem_limit_bytes=32 * 1024 * 1024),
        cost_estimate=pl.CostEstimate(
            flops=flops,
            transcendentals=transcendentals,
            bytes_accessed=bytes_accessed),
    )(state, act_in,
      packed["w1"], packed["b1"], packed["w2"], packed["b2"],
      packed["wh"], packed["bh"])

    action_out = out[:B, 0:A]
    log_prob = out[:B, _LANE:_LANE + A]
    entropy = out[:B, 2 * _LANE:2 * _LANE + A]
    value = out[:B, 3 * _LANE:3 * _LANE + 1]
    return action_out, log_prob, entropy, value


# ----------------------------------------------------------------------------
# Deterministic parameter init (orthogonal weights, zero biases),
# mirroring layer_init(nn.Linear(...)) from the PyTorch module.
# ----------------------------------------------------------------------------
def _orthogonal(key, rows, cols, scale=1.0):
    transpose = rows < cols
    n, m = (cols, rows) if transpose else (rows, cols)
    a = jax.random.normal(key, (n, m), dtype=jnp.float32)
    q, r = jnp.linalg.qr(a)
    q = q * jnp.sign(jnp.diagonal(r))[None, :]
    if transpose:
        q = q.T
    return (scale * q[:rows, :cols]).astype(jnp.float32)


def init_params(key, state_size, action_size, fc1_units=1024, fc2_units=512):
    ks = jax.random.split(key, 5)
    # PyTorch Linear weight is (out, in); we store transposed (in, out) for x @ W.
    w1 = _orthogonal(ks[0], fc1_units, state_size).T
    w2 = _orthogonal(ks[1], fc2_units, fc1_units).T
    wm = _orthogonal(ks[2], action_size, fc2_units).T
    ws = _orthogonal(ks[3], action_size, fc2_units).T
    wc = _orthogonal(ks[4], 1, fc2_units).T
    return {
        "w1": w1, "b1": jnp.zeros((1, fc1_units), jnp.float32),
        "w2": w2, "b2": jnp.zeros((1, fc2_units), jnp.float32),
        "wm": wm, "bm": jnp.zeros((1, action_size), jnp.float32),
        "ws": ws, "bs": jnp.zeros((1, action_size), jnp.float32),
        "wc": wc, "bc": jnp.zeros((1, 1), jnp.float32),
        # self.std = nn.Parameter(torch.zeros(1, action_size)) exists in the
        # PyTorch module but is unused in forward(); kept here for parity.
        "std_param": jnp.zeros((1, action_size), jnp.float32),
    }


# ----------------------------------------------------------------------------
# Pure-JAX reference (same bf16 weight/activation quantization) for checking
# ----------------------------------------------------------------------------
def _reference_forward(packed, state, action):
    A = packed["A"]
    w1 = packed["w1"].astype(jnp.float32)
    w2 = packed["w2"].astype(jnp.float32)
    wh = packed["wh"].astype(jnp.float32)
    x = state.astype(jnp.bfloat16).astype(jnp.float32)
    h1 = jnp.maximum(x @ w1 + packed["b1"], 0.0)
    h1 = h1.astype(jnp.bfloat16).astype(jnp.float32)
    h2 = jnp.maximum(h1 @ w2 + packed["b2"], 0.0)
    h2 = h2.astype(jnp.bfloat16).astype(jnp.float32)
    heads = h2 @ wh + packed["bh"]
    mean = jnp.tanh(heads[:, 0:A])
    std = jax.nn.softplus(heads[:, _LANE:_LANE + A])
    value = heads[:, 2 * _LANE:2 * _LANE + 1]
    logp = -0.5 * ((action - mean) / std) ** 2 - jnp.log(std) - _HALF_LOG_2PI
    ent = 0.5 + _HALF_LOG_2PI + jnp.log(std)
    return logp, ent, value


if __name__ == "__main__":
    key = jax.random.PRNGKey(0)
    k_param, k_state, k_sample = jax.random.split(key, 3)

    # Small shapes consistent with the module (fc sizes are constructor args).
    B, STATE_SIZE, ACTION_SIZE = 8, 32, 16
    FC1, FC2 = 256, 128

    raw_params = init_params(k_param, STATE_SIZE, ACTION_SIZE, FC1, FC2)
    packed = pack_params(raw_params)
    state = jax.random.normal(k_state, (B, STATE_SIZE), dtype=jnp.float32)

    # Path 1: action is None -> kernel samples via reparameterization.
    action, log_prob, entropy, value = actor_critic_forward(
        packed, state, action=None, sample_key=k_sample)
    jax.block_until_ready((action, log_prob, entropy, value))

    # Path 2: evaluate the (now fixed) action through the kernel again and
    # compare log_prob / entropy / value against a pure-JAX reference.
    action2, log_prob2, entropy2, value2 = actor_critic_forward(
        packed, state, action=action)
    jax.block_until_ready((action2, log_prob2, entropy2, value2))

    ref_logp, ref_ent, ref_val = _reference_forward(packed, state, action)
    assert jnp.allclose(action2, action, atol=1e-5)
    assert jnp.allclose(log_prob2, ref_logp, atol=2e-3, rtol=2e-3)
    assert jnp.allclose(entropy2, ref_ent, atol=2e-3, rtol=2e-3)
    assert jnp.allclose(value2, ref_val, atol=2e-3, rtol=2e-3)
    assert bool(jnp.all(jnp.isfinite(log_prob))) and bool(jnp.all(jnp.isfinite(entropy)))

    print("KERNEL_OK")
</pallas_src>

<mosaic_0001>
module attributes {stable_mosaic.version = 11 : i64} {
  func.func @_actor_critic_kernel(%arg0: i32, %arg1: memref<16x32xbf16, #tpu.memory_space<vmem>>, %arg2: memref<16x128xf32, #tpu.memory_space<vmem>>, %arg3: memref<32x256xbf16, #tpu.memory_space<vmem>>, %arg4: memref<1x256xf32, #tpu.memory_space<vmem>>, %arg5: memref<256x128xbf16, #tpu.memory_space<vmem>>, %arg6: memref<1x128xf32, #tpu.memory_space<vmem>>, %arg7: memref<128x384xbf16, #tpu.memory_space<vmem>>, %arg8: memref<1x384xf32, #tpu.memory_space<vmem>>, %arg9: memref<16x512xf32, #tpu.memory_space<vmem>>) attributes {dimension_semantics = [#tpu.dimension_semantics<parallel>], iteration_bounds = array<i64: 1>, scalar_prefetch = 0 : i64, scratch_operands = 0 : i64, tpu.core_type = #tpu.core_type<tc>, window_params = [{transform_indices = @transform_0, window_bounds = array<i64: 16, 32>}, {transform_indices = @transform_1, window_bounds = array<i64: 16, 128>}, {pipeline_mode = #tpu.pipeline_mode<synchronous>, transform_indices = @transform_2, window_bounds = array<i64: 32, 256>}, {pipeline_mode = #tpu.pipeline_mode<synchronous>, transform_indices = @transform_3, window_bounds = array<i64: 1, 256>}, {pipeline_mode = #tpu.pipeline_mode<synchronous>, transform_indices = @transform_4, window_bounds = array<i64: 256, 128>}, {pipeline_mode = #tpu.pipeline_mode<synchronous>, transform_indices = @transform_5, window_bounds = array<i64: 1, 128>}, {pipeline_mode = #tpu.pipeline_mode<synchronous>, transform_indices = @transform_6, window_bounds = array<i64: 128, 384>}, {pipeline_mode = #tpu.pipeline_mode<synchronous>, transform_indices = @transform_7, window_bounds = array<i64: 1, 384>}, {transform_indices = @transform_8, window_bounds = array<i64: 16, 512>}]} {
    %c0 = arith.constant 0 : index
    %c0_0 = arith.constant 0 : index
    %0 = vector.load %arg1[%c0, %c0_0] : memref<16x32xbf16, #tpu.memory_space<vmem>>, vector<16x32xbf16>
    %c0_1 = arith.constant 0 : index
    %c0_2 = arith.constant 0 : index
    %1 = vector.load %arg3[%c0_1, %c0_2] : memref<32x256xbf16, #tpu.memory_space<vmem>>, vector<32x256xbf16>
    %cst = arith.constant dense<0.000000e+00> : vector<16x256xf32>
    %2 = tpu.matmul %0, %1, %cst {dimension_numbers = #tpu.dot_dimension_numbers<[1], [0], [0], [1], [0, 0, 1, 1], [], []>} : vector<16x32xbf16>, vector<32x256xbf16>, vector<16x256xf32> -> vector<16x256xf32>
    %c0_3 = arith.constant 0 : index
    %c0_4 = arith.constant 0 : index
    %3 = vector.load %arg4[%c0_3, %c0_4] : memref<1x256xf32, #tpu.memory_space<vmem>>, vector<1x256xf32>
    %4 = vector.broadcast %3 : vector<1x256xf32> to vector<16x256xf32>
    %5 = arith.addf %2, %4 : vector<16x256xf32>
    %cst_5 = arith.constant 0.000000e+00 : f32
    %6 = vector.broadcast %cst_5 : f32 to vector<16x256xf32>
    %7 = arith.maximumf %5, %6 : vector<16x256xf32>
    %8 = arith.truncf %7 : vector<16x256xf32> to vector<16x256xbf16>
    %c0_6 = arith.constant 0 : index
    %c0_7 = arith.constant 0 : index
    %9 = vector.load %arg5[%c0_6, %c0_7] : memref<256x128xbf16, #tpu.memory_space<vmem>>, vector<256x128xbf16>
    %cst_8 = arith.constant dense<0.000000e+00> : vector<16x128xf32>
    %10 = tpu.matmul %8, %9, %cst_8 {dimension_numbers = #tpu.dot_dimension_numbers<[1], [0], [0], [1], [0, 0, 1, 1], [], []>} : vector<16x256xbf16>, vector<256x128xbf16>, vector<16x128xf32> -> vector<16x128xf32>
    %c0_9 = arith.constant 0 : index
    %c0_10 = arith.constant 0 : index
    %11 = vector.load %arg6[%c0_9, %c0_10] : memref<1x128xf32, #tpu.memory_space<vmem>>, vector<1x128xf32>
    %12 = vector.broadcast %11 : vector<1x128xf32> to vector<16x128xf32>
    %13 = arith.addf %10, %12 : vector<16x128xf32>
    %cst_11 = arith.constant 0.000000e+00 : f32
    %14 = vector.broadcast %cst_11 : f32 to vector<16x128xf32>
    %15 = arith.maximumf %13, %14 : vector<16x128xf32>
    %16 = arith.truncf %15 : vector<16x128xf32> to vector<16x128xbf16>
    %c0_12 = arith.constant 0 : index
    %c0_13 = arith.constant 0 : index
    %17 = vector.load %arg7[%c0_12, %c0_13] : memref<128x384xbf16, #tpu.memory_space<vmem>>, vector<128x384xbf16>
    %cst_14 = arith.constant dense<0.000000e+00> : vector<16x384xf32>
    %18 = tpu.matmul %16, %17, %cst_14 {dimension_numbers = #tpu.dot_dimension_numbers<[1], [0], [0], [1], [0, 0, 1, 1], [], []>} : vector<16x128xbf16>, vector<128x384xbf16>, vector<16x384xf32> -> vector<16x384xf32>
    %c0_15 = arith.constant 0 : index
    %c0_16 = arith.constant 0 : index
    %19 = vector.load %arg8[%c0_15, %c0_16] : memref<1x384xf32, #tpu.memory_space<vmem>>, vector<1x384xf32>
    %20 = vector.broadcast %19 : vector<1x384xf32> to vector<16x384xf32>
    %21 = arith.addf %18, %20 : vector<16x384xf32>
    %22 = vector.extract_strided_slice %21 {offsets = [0, 0], sizes = [16, 128], strides = [1, 1]} : vector<16x384xf32> to vector<16x128xf32>
    %23 = math.tanh %22 : vector<16x128xf32>
    %24 = vector.extract_strided_slice %21 {offsets = [0, 128], sizes = [16, 128], strides = [1, 1]} : vector<16x384xf32> to vector<16x128xf32>
    %25 = math.absf %24 : vector<16x128xf32>
    %cst_17 = arith.constant 0.000000e+00 : f32
    %26 = vector.broadcast %cst_17 : f32 to vector<16x128xf32>
    %27 = arith.subf %26, %25 : vector<16x128xf32>
    %28 = math.exp %27 : vector<16x128xf32>
    %cst_18 = arith.constant 0.000000e+00 : f32
    %29 = vector.broadcast %cst_18 : f32 to vector<16x128xf32>
    %30 = arith.maximumf %24, %29 : vector<16x128xf32>
    %cst_19 = arith.constant 1.000000e+00 : f32
    %31 = vector.broadcast %cst_19 : f32 to vector<16x128xf32>
    %32 = arith.addf %31, %28 : vector<16x128xf32>
    %33 = math.log %32 : vector<16x128xf32>
    %34 = arith.addf %30, %33 : vector<16x128xf32>
    %cst_20 = arith.constant -8.000000e+00 : f32
    %35 = vector.broadcast %cst_20 : f32 to vector<16x128xf32>
    %36 = arith.cmpf olt, %24, %35 : vector<16x128xf32>
    %37 = arith.select %36, %28, %34 : vector<16x128xi1>, vector<16x128xf32>
    %38 = vector.extract_strided_slice %21 {offsets = [0, 256], sizes = [16, 128], strides = [1, 1]} : vector<16x384xf32> to vector<16x128xf32>
    %c0_21 = arith.constant 0 : index
    %c0_22 = arith.constant 0 : index
    %39 = vector.load %arg2[%c0_21, %c0_22] : memref<16x128xf32, #tpu.memory_space<vmem>>, vector<16x128xf32>
    %40 = arith.mulf %37, %39 : vector<16x128xf32>
    %41 = arith.addf %23, %40 : vector<16x128xf32>
    %42 = math.log %37 : vector<16x128xf32>
    %43 = arith.subf %41, %23 : vector<16x128xf32>
    %44 = arith.divf %43, %37 : vector<16x128xf32>
    %cst_23 = arith.constant -5.000000e-01 : f32
    %45 = vector.broadcast %cst_23 : f32 to vector<16x128xf32>
    %46 = arith.mulf %45, %44 : vector<16x128xf32>
    %47 = arith.mulf %46, %44 : vector<16x128xf32>
    %48 = arith.subf %47, %42 : vector<16x128xf32>
    %cst_24 = arith.constant 0.918938517 : f32
    %49 = vector.broadcast %cst_24 : f32 to vector<16x128xf32>
    %50 = arith.subf %48, %49 : vector<16x128xf32>
    %cst_25 = arith.constant 1.41893852 : f32
    %51 = vector.broadcast %cst_25 : f32 to vector<16x128xf32>
    %52 = arith.addf %51, %42 : vector<16x128xf32>
    %c0_26 = arith.constant 0 : index
    %c0_27 = arith.constant 0 : index
    %53 = vector.load %arg9[%c0_26, %c0_27] : memref<16x512xf32, #tpu.memory_space<vmem>>, vector<16x128xf32>
    tpu.vector_store %arg9[%c0_26, %c0_27], %41 {strides = array<i32>} : memref<16x512xf32, #tpu.memory_space<vmem>>, vector<16x128xf32>,
    %c0_28 = arith.constant 0 : index
    %c128 = arith.constant 128 : index
    %54 = vector.load %arg9[%c0_28, %c128] : memref<16x512xf32, #tpu.memory_space<vmem>>, vector<16x128xf32>
    tpu.vector_store %arg9[%c0_28, %c128], %50 {strides = array<i32>} : memref<16x512xf32, #tpu.memory_space<vmem>>, vector<16x128xf32>,
    %c0_29 = arith.constant 0 : index
    %c256 = arith.constant 256 : index
    %55 = vector.load %arg9[%c0_29, %c256] : memref<16x512xf32, #tpu.memory_space<vmem>>, vector<16x128xf32>
    tpu.vector_store %arg9[%c0_29, %c256], %52 {strides = array<i32>} : memref<16x512xf32, #tpu.memory_space<vmem>>, vector<16x128xf32>,
    %c0_30 = arith.constant 0 : index
    %c384 = arith.constant 384 : index
    %56 = vector.load %arg9[%c0_30, %c384] : memref<16x512xf32, #tpu.memory_space<vmem>>, vector<16x128xf32>
    tpu.vector_store %arg9[%c0_30, %c384], %38 {strides = array<i32>} : memref<16x512xf32, #tpu.memory_space<vmem>>, vector<16x128xf32>,
    return
  }
  func.func @transform_0(%arg0: i32) -> (i32, i32) {
    %c0_i32 = arith.constant 0 : i32
    %c0_i32_0 = arith.constant 0 : i32
    return %arg0, %c0_i32 : i32, i32
  }
  func.func @transform_1(%arg0: i32) -> (i32, i32) {
    %c0_i32 = arith.constant 0 : i32
    %c0_i32_0 = arith.constant 0 : i32
    return %arg0, %c0_i32 : i32, i32
  }
  func.func @transform_2(%arg0: i32) -> (i32, i32) {
    %c0_i32 = arith.constant 0 : i32
    %c0_i32_0 = arith.constant 0 : i32
    %c0_i32_1 = arith.constant 0 : i32
    return %c0_i32, %c0_i32_0 : i32, i32
  }
  func.func @transform_3(%arg0: i32) -> (i32, i32) {
    %c0_i32 = arith.constant 0 : i32
    %c0_i32_0 = arith.constant 0 : i32
    %c0_i32_1 = arith.constant 0 : i32
    return %c0_i32, %c0_i32_0 : i32, i32
  }
  func.func @transform_4(%arg0: i32) -> (i32, i32) {
    %c0_i32 = arith.constant 0 : i32
    %c0_i32_0 = arith.constant 0 : i32
    %c0_i32_1 = arith.constant 0 : i32
    return %c0_i32, %c0_i32_0 : i32, i32
  }
  func.func @transform_5(%arg0: i32) -> (i32, i32) {
    %c0_i32 = arith.constant 0 : i32
    %c0_i32_0 = arith.constant 0 : i32
    %c0_i32_1 = arith.constant 0 : i32
    return %c0_i32, %c0_i32_0 : i32, i32
  }
  func.func @transform_6(%arg0: i32) -> (i32, i32) {
    %c0_i32 = arith.constant 0 : i32
    %c0_i32_0 = arith.constant 0 : i32
    %c0_i32_1 = arith.constant 0 : i32
    return %c0_i32, %c0_i32_0 : i32, i32
  }
  func.func @transform_7(%arg0: i32) -> (i32, i32) {
    %c0_i32 = arith.constant 0 : i32
    %c0_i32_0 = arith.constant 0 : i32
    %c0_i32_1 = arith.constant 0 : i32
    return %c0_i32, %c0_i32_0 : i32, i32
  }
  func.func @transform_8(%arg0: i32) -> (i32, i32) {
    %c0_i32 = arith.constant 0 : i32
    %c0_i32_0 = arith.constant 0 : i32
    return %arg0, %c0_i32 : i32, i32
  }
}

</mosaic_0001>

<bundles_post_ra>
// kernel: tpu_custom_call.1
= control target key start
LH: loop header
LB: loop body
LE: loop exit
PB: predicated region body
PF: predicated region fallthrough
CT: control target
= control target key end

     0   :  { %13 = vsyncpa [#allocation3], 0  ;;  %s1149_s0 = inlined_call_operand.hbm [shape: bf16[16,32], index: 0, kind: input, shape index: {}]   ;;  %s1150_s1 = inlined_call_operand.hbm [shape: f32[16,128], index: 1, kind: input, shape index: {}]   ;;  %s1151_s2 = inlined_call_operand.hbm [shape: bf16[32,256], index: 2, kind: input, shape index: {}]   ;;  %s1152_s3 = inlined_call_operand.vmem [shape: f32[1,256], index: 3, kind: input, shape index: {}]   ;;  %s1153_s4 = inlined_call_operand.hbm [shape: bf16[256,128], index: 4, kind: input, shape index: {}]   ;;  %s1154_s5 = inlined_call_operand.vmem [shape: f32[1,128], index: 5, kind: input, shape index: {}]   ;;  %s1155_s6 = inlined_call_operand.hbm [shape: bf16[128,384], index: 6, kind: input, shape index: {}]   ;;  %s1156_s7 = inlined_call_operand.vmem [shape: f32[1,384], index: 7, kind: input, shape index: {}]   ;;  %s1157_s8 = inlined_call_operand.hbm [shape: f32[16,512], index: 8, kind: output, shape index: {}]  }
   0x1   :  { %14 = vsyncpa [#allocation6], 0 }
   0x2   :  { %15 = vsyncpa [#allocation9], 0 }
   0x3   :  { %16 = vsyncpa [#allocation4], 0  ;;  %s1032_s27 = smov [#allocation5]  }
   0x4   :  { %s34_s28 = sshll.u32 %s1032_s27, 4  ;;  %s35_s28 = int_to_ptr.vmem [resolvable:$true] %s34_s28 }
   0x5   :  { %s912_s29 = scalar_lea.vmem %s35_s28, 256  ;;  %p917_p1 = scmp.lt.s32.totalorder %s35_s28, %s35_s28 }
   0x6   :  { %p913_p0 = scmp.ne.s32.totalorder %s35_s28, %s912_s29  ;;  %p918_p2 = scmp.lt.s32.totalorder %s912_s29, %s912_s29 }
   0x8   :  { %p919_p3 = por %p918_p2, %p917_p1 }
   0xa   :  { %p920_p4 = pnand %p919_p3, %p913_p0 }
   0xc   :  { %923 = shalt.err (!%p920_p4)
}
   0xd   :  { %s1033_s30 = smov 128   ;;  %s1034_s9 = smov 8  }
   0xe   :  { %40 = dma.hbm_to_vmem [thread:$0]  %s1150_s1, 256, %s35_s28, [#allocation6], %s1033_s30, %s1033_s30, %s1034_s9  }
   0xf   :  { %s1035_s12 = smov [#allocation8]   ;;  %s1036_s14 = smov [#allocation2]  }
  0x10   :  { %s60_s13 = sshll.u32 %s1035_s12, 4  ;;  %s22_s15 = sshll.u32 %s1036_s14, 4  ;;  %s61_s13 = int_to_ptr.vmem [resolvable:$true] %s60_s13  ;;  %s23_s15 = int_to_ptr.vmem [resolvable:$true] %s22_s15 }
  0x11   :  { %s932_s16 = scalar_lea.vmem %s61_s13, 2048  ;;  %p937_p6 = scmp.lt.s32.totalorder %s61_s13, %s61_s13 }
  0x12   :  { %p933_p5 = scmp.ne.s32.totalorder %s61_s13, %s932_s16  ;;  %p938_p7 = scmp.lt.s32.totalorder %s932_s16, %s932_s16 }
  0x14   :  { %p939_p8 = por %p938_p7, %p937_p6 }
  0x16   :  { %p940_p9 = pnand %p939_p8, %p933_p5 }
  0x18   :  { %943 = shalt.err (!%p940_p9)
}
  0x19   :  { %s1037_s17 = smov 64   ;;  %s1038_s18 = smov 4  }
  0x1a   :  { %66 = dma.hbm_to_vmem [thread:$0]  %s1153_s4, 2048, %s61_s13, [#allocation9], %s1037_s17, %s1037_s17, %s1038_s18  }
  0x1b   :  { %s952_s1 = scalar_lea.vmem %s23_s15, 128  ;;  %p957_p11 = scmp.lt.s32.totalorder %s23_s15, %s23_s15 }
  0x1c   :  { %p953_p10 = scmp.ne.s32.totalorder %s23_s15, %s952_s1  ;;  %p958_p12 = scmp.lt.s32.totalorder %s952_s1, %s952_s1 }
  0x1e   :  { %p959_p13 = por %p958_p12, %p957_p11 }
  0x20   :  { %p960_p0 = pnand %p959_p13, %p953_p10 }
  0x22   :  { %963 = shalt.err (!%p960_p0)
}
  0x23   :  { %28 = dma.hbm_to_vmem [thread:$0]  %s1149_s0, 128, %s23_s15, [#allocation3], %s1037_s17, %s1037_s17, %s1038_s18  }
  0x24   :  { %s1039_s23 = smov [#allocation7]   ;;  %s1040_s25 = smov [#allocation10]  }
  0x25   :  { %s46_s24 = sshll.u32 %s1039_s23, 4  ;;  %s74_s26 = sshll.u32 %s1040_s25, 4  ;;  %s47_s24 = int_to_ptr.vmem [resolvable:$true] %s46_s24  ;;  %s75_s26 = int_to_ptr.vmem [resolvable:$true] %s74_s26 }
  0x26   :  { %s972_s27 = scalar_lea.vmem %s47_s24, 512  ;;  %p977_p2 = scmp.lt.s32.totalorder %s47_s24, %s47_s24 }
  0x27   :  { %p973_p1 = scmp.ne.s32.totalorder %s47_s24, %s972_s27  ;;  %p978_p3 = scmp.lt.s32.totalorder %s972_s27, %s972_s27 }
  0x29   :  { %p979_p4 = por %p978_p3, %p977_p2 }
  0x2b   :  { %p980_p5 = pnand %p979_p4, %p973_p1 }
  0x2d   :  { %983 = shalt.err (!%p980_p5)
}
  0x2e   :  { %52 = dma.hbm_to_vmem [thread:$0]  %s1151_s2, 512, %s47_s24, [#allocation6], %s1033_s30, %s1033_s30, %s1034_s9  }
  0x2f   :  { %s992_s0 = scalar_lea.vmem %s75_s26, 3072  ;;  %p997_p7 = scmp.lt.s32.totalorder %s75_s26, %s75_s26 }
  0x30   :  { %p993_p6 = scmp.ne.s32.totalorder %s75_s26, %s992_s0  ;;  %p998_p8 = scmp.lt.s32.totalorder %s992_s0, %s992_s0 }
  0x32   :  { %p999_p9 = por %p998_p8, %p997_p7 }
  0x34   :  { %p1000_p10 = pnand %p999_p9, %p993_p6 }
  0x36   :  { %1003 = shalt.err (!%p1000_p10)
}
  0x37   :  { %s1041_s29 = smov 192   ;;  %s1042_s10 = smov 12  }
  0x38   :  { %80 = dma.hbm_to_vmem [thread:$0]  %s1155_s6, 3072, %s75_s26, [#allocation9], %s1041_s29, %s1041_s29, %s1042_s10  }
  0x39   :  { %1024 = dma.done.wait [#allocation3], 128  }
  0x3a   :  { %1025 = vsyncadd [#allocation3], 4294967168 }
  0x3b   :  { %1026 = dma.done.wait [#allocation6], 768  }
  0x3c   :  { %1027 = vsyncadd [#allocation6], 4294966528 }
  0x3d   :  { %1028 = dma.done.wait [#allocation9], 5120  }
  0x3e   :  { %1029 = vsyncadd [#allocation9], 4294962176  ;;  %v1043_v0 = vmov 0   ;;  %v829_v1 = vld [vmem:[#allocation7 + $0x14] ss:$8 sps:$4 sm:$0xff]   ;;  %v835_v5 = vld [vmem:[#allocation2] sm:$0xff]   ;;  %v107_v33 = vlaneseq }
  0x3f   :  { %178 = vmatprep.mubr.bf16.mxu0 %v1043_v0  ;;  %v831_v2 = vld [vmem:[#allocation7 + $0x10] ss:$8 sps:$4 sm:$0xff]   ;;  %158 = vmatprep.subr.bf16.mxu0 %v829_v1  ;;  %v832_v3 = vld [vmem:[#allocation7 + $0x4] ss:$8 sps:$4 sm:$0xff]   ;;  %v834_v4 = vld [vmem:[#allocation7] ss:$8 sps:$4 sm:$0xff]  }
  0x40   :  { %159 = vmatpush1.bf16.msra.mxu0 %v831_v2  ;;  %v836_v6 = vld [vmem:[#allocation8 + $0x78] sm:$0xff]   ;;  %v838_v8 = vld [vmem:[#allocation8 + $0x70] sm:$0xff]   ;;  %vm142_vm0 = vcmask 261120   ;;  %v840_v10 = vld [vmem:[#allocation8 + $0x68] sm:$0xff]   ;;  %v1044_v24 = vmov 0.0   ;;  %v1116_v34 = vshrl.u32 %v107_v33, 7 }
  0x41   :  { %160 = vmatprep.subr.bf16.mxu0 %v832_v3  ;;  %v837_v7 = vld [vmem:[#allocation8 + $0x38] sm:$0xff]   ;;  %761 = vmatprep.subr.bf16.mxu1 %v836_v6  ;;  %v839_v9 = vld [vmem:[#allocation8 + $0x30] sm:$0xff]   ;;  %v841_v11 = vld [vmem:[#allocation8 + $0x28] sm:$0xff]   ;;  %vm1045_vm1 = vmmov 0  }
  0x42   :  { %762 = vmatpush3.bf16.msra.mxu1 %v837_v7  ;;  %v842_v12 = vld [vmem:[#allocation8 + $0x60] sm:$0xff]   ;;  %v844_v14 = vld [vmem:[#allocation8 + $0x58] sm:$0xff]   ;;  %v846_v16 = vld [vmem:[#allocation8 + $0x50] sm:$0xff]   ;;  %v113_v35 = vsub.s32 1, %v1116_v34  ;;  %v109_v36 = vsub.s32 0, %v1116_v34 }
  0x43   :  { %763 = vmatprep.subr.bf16.mxu1 %v838_v8  ;;  %v843_v13 = vld [vmem:[#allocation8 + $0x20] sm:$0xff]   ;;  %v845_v15 = vld [vmem:[#allocation8 + $0x18] sm:$0xff]   ;;  %v847_v17 = vld [vmem:[#allocation8 + $0x10] sm:$0xff]  }
  0x44   :  { %161 = vmatpush1.bf16.msra.mxu0 %v834_v4  ;;  %v848_v18 = vld [vmem:[#allocation8 + $0x48] sm:$0xff]   ;;  %v850_v20 = vld [vmem:[#allocation8 + $0x40] sm:$0xff]   ;;  %v856_v26 = vld [vmem:[#allocation10 + $0x90] ss:$12 sps:$4 sm:$0xff]  }
  0x45   :  { %v849_v19 = vld [vmem:[#allocation8 + $0x8] sm:$0xff]   ;;  %v851_v21 = vld [vmem:[#allocation8] sm:$0xff]   ;;  %v855_v53 = vld [vmem:[#allocation10 + $0xb0] ss:$12 sps:$4 sm:$0xff]  }
  0x46   :  { %764 = vmatpush3.bf16.msra.mxu1 %v839_v9  ;;  %v852_v22 = vld [vmem:[#allocation10 + $0xa8] ss:$12 sps:$4 sm:$0xff]   ;;  %v854_v23 = vld [vmem:[#allocation10 + $0xac] ss:$12 sps:$4 sm:$0xff]   ;;  %v866_v29 = vld [vmem:[#allocation10 + $0x64] ss:$12 sps:$4 sm:$0xff]  }
  0x47   :  { %717 = vmatmul.mubr.msk.bf16.vlgmr.msra.gmra.mxu0 %vm142_vm0, %v835_v5  ;;  %765 = vmatprep.subr.bf16.mxu1 %v840_v10  ;;  %v858_v25 = vld [vmem:[#allocation10 + $0x94] ss:$12 sps:$4 sm:$0xff]   ;;  %v862_v27 = vld [vmem:[#allocation10 + $0x7c] ss:$12 sps:$4 sm:$0xff]   ;;  %v860_v28 = vld [vmem:[#allocation10 + $0x78] ss:$12 sps:$4 sm:$0xff]  }
  0x48   :  { %583 = vmatprep.mubr.bf16.mxu0 %v1043_v0  ;;  %551 = vmatprep.subr.bf16.mxu0 %v854_v23  ;;  %v864_v30 = vld [vmem:[#allocation10 + $0x60] ss:$12 sps:$4 sm:$0xff]   ;;  %v868_v32 = vld [vmem:[#allocation10 + $0x48] ss:$12 sps:$4 sm:$0xff]   ;;  %v859_v55 = vld [vmem:[#allocation10 + $0x98] ss:$12 sps:$4 sm:$0xff]  }
  0x49   :  { %552 = vmatpush1.bf16.msra.mxu0 %v852_v22  ;;  %v870_v31 = vld [vmem:[#allocation10 + $0x4c] ss:$12 sps:$4 sm:$0xff]   ;;  %v105_v37 = vld [vmem:[%s1152_s3] sm:$0x3]  ;;  %v871_v58 = vld [vmem:[#allocation10 + $0x50] ss:$12 sps:$4 sm:$0xff]  }
  0x4a   :  { %766 = vmatpush3.bf16.msra.mxu1 %v841_v11  ;;  %553 = vmatprep.subr.bf16.mxu0 %v858_v25  ;;  %v114_v39 = vrot.slane %v105_v37, %v113_v35  ;;  %v110_v40 = vrot.slane %v105_v37, %v109_v36  ;;  %v863_v56 = vld [vmem:[#allocation10 + $0x80] ss:$12 sps:$4 sm:$0xff]   ;;  %v867_v57 = vld [vmem:[#allocation10 + $0x68] ss:$12 sps:$4 sm:$0xff]   ;;  %v872_v60 = vld [vmem:[#allocation10 + $0x30] ss:$12 sps:$4 sm:$0xff]  }
  0x4b   :  { %767 = vmatprep.subr.bf16.mxu1 %v842_v12  ;;  %v874_v59 = vld [vmem:[#allocation10 + $0x34] ss:$12 sps:$4 sm:$0xff]   ;;  %v875_v61 = vld [vmem:[#allocation10 + $0x38] ss:$12 sps:$4 sm:$0xff]   ;;  %v878_v62 = vld [vmem:[#allocation10 + $0x1c] ss:$12 sps:$4 sm:$0xff]  }
  0x4c   :  { %v876_v63 = vld [vmem:[#allocation10 + $0x18] ss:$12 sps:$4 sm:$0xff]   ;;  %v879_v0 = vld [vmem:[#allocation10 + $0x20] ss:$12 sps:$4 sm:$0xff]   ;;  %v883_v3 = vld [vmem:[#allocation10 + $0x8] ss:$12 sps:$4 sm:$0xff]  }
  0x4d   :  { %554 = vmatpush1.bf16.msra.mxu0 %v856_v26  ;;  %v882_v1 = vld [vmem:[#allocation10 + $0x4] ss:$12 sps:$4 sm:$0xff]   ;;  %v880_v2 = vld [vmem:[#allocation10] ss:$12 sps:$4 sm:$0xff]   ;;  %v718_v7 = vld [vmem:[%s1154_s5] ss:$0 sm:$0xff] }
  0x4e   :  { %768 = vmatpush3.bf16.msra.mxu1 %v843_v13  ;;  %555 = vmatprep.subr.bf16.mxu0 %v862_v27  ;;  %s1046_s5 = smov [#allocation11]  }
  0x4f   :  { %769 = vmatprep.subr.bf16.mxu1 %v844_v14 }
  0x51   :  { %556 = vmatpush1.bf16.msra.mxu0 %v860_v28 }
  0x52   :  { %770 = vmatpush3.bf16.msra.mxu1 %v845_v15  ;;  %557 = vmatprep.subr.bf16.mxu0 %v866_v29 }
  0x53   :  { %771 = vmatprep.subr.bf16.mxu1 %v846_v16  ;;  %v418_v16 = vsub.s32 2, %v1116_v34 }
  0x55   :  { %558 = vmatpush1.bf16.msra.mxu0 %v864_v30 }
  0x56   :  { %772 = vmatpush3.bf16.msra.mxu1 %v847_v17  ;;  %559 = vmatprep.subr.bf16.mxu0 %v870_v31  ;;  %v406_v17 = vld [vmem:[%s1156_s7] sm:$0x7]  ;;  %s698_s7 = sshll.u32 %s1046_s5, 4  ;;  %s699_s7 = int_to_ptr.vmem [resolvable:$true] %s698_s7 }
  0x57   :  { %773 = vmatprep.subr.bf16.mxu1 %v848_v18  ;;  %v419_v18 = vrot.slane %v406_v17, %v418_v16  ;;  %s1004_s14 = scalar_lea.vmem %s699_s7, 1024  ;;  %p1009_p12 = scmp.lt.s32.totalorder %s699_s7, %s699_s7 }
  0x58   :  { %p1005_p11 = scmp.ne.s32.totalorder %s699_s7, %s1004_s14  ;;  %p1010_p13 = scmp.lt.s32.totalorder %s1004_s14, %s1004_s14 }
  0x59   :  { %560 = vmatpush1.bf16.msra.mxu0 %v868_v32 }
  0x5a   :  { %774 = vmatpush3.bf16.msra.mxu1 %v849_v19  ;;  %561 = vmatprep.subr.bf16.mxu0 %v874_v59  ;;  %v415_v19 = vrot.slane %v406_v17, %v113_v35  ;;  %p1011_p0 = por %p1010_p13, %p1009_p12 }
  0x5b   :  { %775 = vmatprep.subr.bf16.mxu1 %v850_v20 }
  0x5c   :  { %p1012_p1 = pnand %p1011_p0, %p1005_p11 }
  0x5d   :  { %562 = vmatpush1.bf16.msra.mxu0 %v872_v60 }
  0x5e   :  { %776 = vmatpush3.bf16.msra.mxu1 %v851_v21  ;;  %563 = vmatprep.subr.bf16.mxu0 %v878_v62 }
  0x5f   :  { %792 = vmatprep.subr.bf16.mxu1 %v1044_v24 }
  0x61   :  { %564 = vmatpush1.bf16.msra.mxu0 %v876_v63 }
  0x62   :  { %565 = vmatprep.subr.bf16.mxu0 %v882_v1 }
  0x65   :  { %566 = vmatpush1.bf16.msra.mxu0 %v880_v2 }
 0x107   :  { %v180_v38 = vpop.f32.mrf.mxu0 }
 0x108   :  { %v181_v45 = vadd.f32 %v180_v38, %v110_v40 }
 0x109   :  { %v182_v41 = vpop.f32.mrf.mxu0 }
 0x10a   :  { %v183_v43 = vadd.f32 %v182_v41, %v114_v39  ;;  %v189_v51 = vmax.f32 %v181_v45, 0.0 }
 0x10b   :  { %v184_v42 = vpop.f32.mrf.mxu0 }
 0x10c   :  { %v185_v44 = vadd.f32 %v184_v42, %v110_v40  ;;  %v190_v49 = vmax.f32 %v183_v43, 0.0  ;;  %v411_v42 = vrot.slane %v406_v17, %v109_v36 }
 0x10d   :  { %v186_v46 = vpop.f32.mrf.mxu0 }
 0x10e   :  { %v187_v47 = vadd.f32 %v186_v46, %v114_v39  ;;  %v191_v48 = vmax.f32 %v185_v44, 0.0 }
 0x110   :  { %v192_v50 = vmax.f32 %v187_v47, 0.0  ;;  %v193_v54 = vpack.c.bf16 %v191_v48, %v189_v51  ;;  %v659_v51 = vld [vmem:[#allocation5] sm:$0xff] }
 0x112   :  { %v194_v52 = vpack.c.bf16 %v192_v50, %v190_v49 }
 0x114   :  { %362 = vmatprep.mubr.bf16.mxu1 %v194_v52 }
 0x115   :  { %363 = vmatmul.mubr.bf16.vlgmr.msra.gmra.mxu1 %v193_v54 }
 0x116   :  { %793 = vmatpush3.bf16.msra.mxu1 %v855_v53  ;;  %808 = vmatprep.mubr.msk.bf16.mxu1 %vm1045_vm1, %v1044_v24 }
 0x117   :  { %794 = vmatprep.subr.bf16.mxu1 %v1044_v24 }
 0x11a   :  { %795 = vmatpush3.bf16.msra.mxu1 %v859_v55 }
 0x11b   :  { %796 = vmatprep.subr.bf16.mxu1 %v1044_v24 }
 0x11e   :  { %797 = vmatpush3.bf16.msra.mxu1 %v863_v56 }
 0x11f   :  { %798 = vmatprep.subr.bf16.mxu1 %v1044_v24 }
 0x122   :  { %799 = vmatpush3.bf16.msra.mxu1 %v867_v57  ;;  %v660_v57 = vld [vmem:[#allocation5 + $0x8] sm:$0xff] }
 0x123   :  { %800 = vmatprep.subr.bf16.mxu1 %v1044_v24 }
 0x126   :  { %801 = vmatpush3.bf16.msra.mxu1 %v871_v58 }
 0x127   :  { %802 = vmatprep.subr.bf16.mxu1 %v1044_v24 }
 0x12a   :  { %803 = vmatpush3.bf16.msra.mxu1 %v875_v61 }
 0x12b   :  { %804 = vmatprep.subr.bf16.mxu1 %v1044_v24 }
 0x12e   :  { %805 = vmatpush3.bf16.msra.mxu1 %v879_v0 }
 0x12f   :  { %806 = vmatprep.subr.bf16.mxu1 %v1044_v24 }
 0x132   :  { %807 = vmatpush3.bf16.msra.mxu1 %v883_v3 }
 0x1d5   :  { %v777_v4 = vpop.f32.mrf.mxu1 }
 0x1d7   :  { %v778_v5 = vpop.f32.mrf.mxu1 }
 0x1d8   :  { %v779_v6 = vadd.f32 %v778_v5, %v777_v4 }
 0x1d9   :  { %v780_v8 = vpop.f32.mrf.mxu1 }
 0x1da   :  { %v365_v10 = vadd.f32 %v779_v6, %v718_v7 }
 0x1db   :  { %v781_v9 = vpop.f32.mrf.mxu1 }
 0x1dc   :  { %v782_v11 = vadd.f32 %v781_v9, %v780_v8  ;;  %v371_v13 = vmax.f32 %v365_v10, 0.0 }
 0x1de   :  { %v368_v12 = vadd.f32 %v782_v11, %v718_v7 }
 0x1e0   :  { %v372_v14 = vmax.f32 %v368_v12, 0.0 }
 0x1e2   :  { %v373_v15 = vpack.c.bf16 %v372_v14, %v371_v13 }
 0x1e4   :  { %584 = vmatmul.mubr.bf16.vlgmr.msra.gmra.mxu0 %v373_v15  ;;  %809 = vmatmul.mubr.bf16.vlgmr.msra.gmra.mxu1 %v373_v15 }
 0x2a4   :  { %v585_v20 = vpop.f32.mrf.mxu0  ;;  %v628_v21 = vpop.f32.mrf.mxu1 }
 0x2a5   :  { %v629_v22 = vadd.f32 %v628_v21, %v419_v18  ;;  %v586_v45 = vadd.f32 %v585_v20, %v411_v42 }
 0x2a6   :  { %v587_v23 = vpop.f32.mrf.mxu0  ;;  %v810_v24 = vpop.f32.mrf.mxu1 }
 0x2a7   :  { %691 = vst [vmem:[#allocation11 + $0x18] sm:$0xff] %v629_v22  ;;  %v588_v25 = vadd.f32 %v587_v23, %v415_v19 }
 0x2a8   :  { %v589_v26 = vpop.f32.mrf.mxu0  ;;  %v631_v27 = vpop.f32.mrf.mxu1 }
 0x2a9   :  { %v637_v28 = vand.u32 2147483647, %v588_v25  ;;  %v632_v29 = vadd.f32 %v631_v27, %v419_v18  ;;  %v590_v46 = vadd.f32 %v589_v26, %v411_v42  ;;  %v645_v48 = vmax.f32 %v588_v25, 0.0 }
 0x2aa   :  { %v591_v30 = vpop.f32.mrf.mxu0  ;;  %v811_v31 = vpop.f32.mrf.mxu1  ;;  %vm655_vm2 = vcmp.lt.f32.partialorder %v588_v25, -8.0 }
 0x2ab   :  { %v639_v32 = vsub.f32 0.0, %v637_v28  ;;  %v592_v33 = vadd.f32 %v591_v30, %v415_v19  ;;  %692 = vst [vmem:[#allocation11 + $0x38] sm:$0xff] %v632_v29 }
 0x2ad   :  { %v641_v37 = vmul.f32 1.442695, %v639_v32  ;;  %v638_v38 = vand.u32 2147483647, %v592_v33  ;;  %v646_v54 = vmax.f32 %v592_v33, 0.0  ;;  %vm656_vm3 = vcmp.lt.f32.partialorder %v592_v33, -8.0 }
 0x2af   :  { %884 = vpow2.f32 %v641_v37  ;;  %v640_v35 = vsub.f32 0.0, %v638_v38 }
 0x2b1   :  { %v643_v39 = vmul.f32 1.442695, %v640_v35 }
 0x2b3   :  { %886 = vpow2.f32 %v643_v39 }
 0x2bc   :  { %v885_v40 = vpop.eup %884 }
 0x2bd   :  { %v647_v41 = vadd.f32 1.0, %v885_v40 }
 0x2bf   :  { %888 = vlog2.f32 %v647_v41 }
 0x2c0   :  { %v887_v43 = vpop.eup %886 }
 0x2c1   :  { %v648_v44 = vadd.f32 1.0, %v887_v43 }
 0x2c3   :  { %890 = vlog2.f32 %v648_v44 }
 0x2c4   :  { %892 = vtanh.f32 %v586_v45 }
 0x2c5   :  { %894 = vtanh.f32 %v590_v46 }
 0x2cc   :  { %v889_v47 = vpop.eup %888 }
 0x2cd   :  { %v650_v49 = vmul.f32 0.6931472, %v889_v47 }
 0x2cf   :  { %v653_v50 = vadd.f32 %v650_v49, %v645_v48 }
 0x2d0   :  { %v891_v52 = vpop.eup %890 }
 0x2d1   :  { %v657_v53 = vsel %vm655_vm2, %v885_v40, %v653_v50  ;;  %v652_v55 = vmul.f32 0.6931472, %v891_v52  ;;  %v893_v36 = vpop.eup %892 }
 0x2d2   :  { %v661_v34 = vmul.f32 %v659_v51, %v657_v53  ;;  %896 = vlog2.f32 %v657_v53  ;;  %v895_v61 = vpop.eup %894 }
 0x2d3   :  { %898 = vrcp.f32 %v657_v53  ;;  %v654_v56 = vadd.f32 %v652_v55, %v646_v54 }
 0x2d4   :  { %v663_v58 = vadd.f32 %v893_v36, %v661_v34 }
 0x2d5   :  { %v658_v59 = vsel %vm656_vm3, %v887_v43, %v654_v56 }
 0x2d6   :  { %685 = vst [vmem:[#allocation11] sm:$0xff] %v663_v58  ;;  %v662_v60 = vmul.f32 %v660_v57, %v658_v59  ;;  %900 = vlog2.f32 %v658_v59  ;;  %v669_v0 = vsub.f32 %v663_v58, %v893_v36 }
 0x2d7   :  { %902 = vrcp.f32 %v658_v59 }
 0x2d8   :  { %v664_v62 = vadd.f32 %v895_v61, %v662_v60 }
 0x2da   :  { %686 = vst [vmem:[#allocation11 + $0x20] sm:$0xff] %v664_v62  ;;  %v670_v7 = vsub.f32 %v664_v62, %v895_v61 }
 0x2df   :  { %v897_v63 = vpop.eup %896 }
 0x2e0   :  { %v899_v1 = vpop.eup %898  ;;  %v666_v2 = vmul.f32 0.6931472, %v897_v63 }
 0x2e1   :  { %v672_v3 = vmul.f32 %v899_v1, %v669_v0 }
 0x2e2   :  { %v683_v4 = vadd.f32 1.4189385, %v666_v2 }
 0x2e3   :  { %v901_v5 = vpop.eup %900  ;;  %v675_v6 = vmul.f32 -0.5, %v672_v3 }
 0x2e4   :  { %v903_v8 = vpop.eup %902  ;;  %689 = vst [vmem:[#allocation11 + $0x10] sm:$0xff] %v683_v4  ;;  %v668_v9 = vmul.f32 0.6931472, %v901_v5 }
 0x2e5   :  { %v677_v10 = vmul.f32 %v675_v6, %v672_v3  ;;  %v674_v11 = vmul.f32 %v903_v8, %v670_v7 }
 0x2e6   :  { %v684_v12 = vadd.f32 1.4189385, %v668_v9 }
 0x2e7   :  { %v679_v13 = vsub.f32 %v677_v10, %v666_v2  ;;  %v676_v14 = vmul.f32 -0.5, %v674_v11 }
 0x2e8   :  { %690 = vst [vmem:[#allocation11 + $0x30] sm:$0xff] %v684_v12 }
 0x2e9   :  { %v759_v15 = vadd.f32 -0.9189385, %v679_v13  ;;  %v678_v16 = vmul.f32 %v676_v14, %v674_v11 }
 0x2eb   :  { %687 = vst [vmem:[#allocation11 + $0x8] sm:$0xff] %v759_v15  ;;  %v680_v17 = vsub.f32 %v678_v16, %v668_v9 }
 0x2ed   :  { %v760_v18 = vadd.f32 -0.9189385, %v680_v17 }
 0x2ef   :  { %688 = vst [vmem:[#allocation11 + $0x28] sm:$0xff] %v760_v18 }
 0x2f0   :  { %1015 = shalt.err (!%p1012_p1)
}
 0x2f1   :  { %s1047_s15 = smov 512   ;;  %s1048_s16 = smov 32  }
 0x2f2   :  { %704 = dma.vmem_to_hbm [thread:$0]  %s699_s7, 1024, %s1157_s8, [#allocation4], %s1047_s15, %s1047_s15, %s1048_s16  }
 0x2f3   :  { %1030 = dma.done.wait [#allocation4], 1024  }
 0x2f4   :  { %1031 = vsyncadd [#allocation4], 4294966272 }
 0x2f5   :  { %708 = vsyncpa [#allocation3], 1 }
 0x2f6   :  { %709 = vsyncpa [#allocation6], 1 }
 0x2f7   :  { %710 = vsyncpa [#allocation9], 1 }
 0x2f8   :  { %711 = vsyncpa [#allocation4], 1 }

</bundles_post_ra>
